<compile_context>
chip_gen: v6e
topology: v6e:2x2x1
jax: 0.10.0
libtpu: 0.0.40
codegen_flags: <defaults>
</compile_context>

<pallas_src>
import functools

import jax
import jax.numpy as jnp
from jax.experimental import pallas as pl
from jax.experimental.pallas import tpu as pltpu


_TS_CANDIDATES = (2048, 1024, 512, 256, 128)


def _pick_tb(B):
    """Sublane-aligned batch tile. Prefers >= 2 batch blocks (when B allows) so
    the 'parallel' grid axis can be split across v7x's two TensorCores."""
    cap = B if B <= 8 else max(8, B // 2)
    for c in (128, 64, 32, 16, 8):
        if c <= cap and B % c == 0:
            return c
    return B  # no aligned divisor: single full-batch block (legal: equals dim)


def _seq_tiling(S):
    """Return (TS, S_pad): a 128-multiple sequence tile and the (possibly padded)
    sequence length it divides.  Never falls back to a full-S block."""
    for c in _TS_CANDIDATES:
        if c <= S and S % c == 0:
            return c, S
    unit = 512 if S >= 512 else 128
    S_pad = -(-S // unit) * unit
    for c in _TS_CANDIDATES:
        if c <= S_pad and S_pad % c == 0:
            return c, S_pad
    return 128, S_pad  # unreachable (S_pad is a multiple of 128)


def _pad_seq(x, S_pad):
    S = x.shape[1]
    if S_pad == S:
        return x
    return jnp.pad(x, ((0, 0), (0, S_pad - S)))  # zero pad -> masked out


def _vmem_limit_bytes(per_step_input_bytes):
    # Double-buffered pipeline inputs + scratch/outputs slack; capped below the
    # smallest physical VMEM (v7x: 64 MiB).
    need = 2 * per_step_input_bytes + (2 << 20)
    return int(min(max(need, 8 << 20), 64 << 20))


def _accumulate_and_finalize(d_c, d_r, loss_ref, cr_ref, rr_ref,
                             acc_c, acc_r, beta, gamma):
    """Accumulate the two masked difference streams for this (TB, TS) tile into
    (TB, 128) lane-wise accumulators; epilogue on the last sequence step."""
    sj = pl.program_id(1)

    @pl.when(sj == 0)
    def _init():
        acc_c[...] = jnp.zeros_like(acc_c)
        acc_r[...] = jnp.zeros_like(acc_r)

    ts = d_c.shape[-1]
    pc = acc_c[...]
    pr = acc_r[...]
    # Static, 128-aligned lane slices: pure VPU adds; the single XLU cross-lane
    # reduce is deferred to the epilogue.
    for j in range(ts // 128):
        sl = slice(j * 128, (j + 1) * 128)
        pc = pc + d_c[:, sl]
        pr = pr + d_r[:, sl]
    acc_c[...] = pc
    acc_r[...] = pr

    @pl.when(sj == pl.num_programs(1) - 1)
    def _finalize():
        a = jnp.sum(acc_c[...], axis=-1, keepdims=True)  # sum((lac - lrc) * cm)
        b = jnp.sum(acc_r[...], axis=-1, keepdims=True)  # sum((lar - lrr) * rm)
        # gamma/beta is Python-evaluated: beta == 0.0 raises ZeroDivisionError at
        # trace time, same as the torch module's Python-float division would.
        logits = a - b - (gamma / beta)
        z = beta * logits
        # Numerically stable logsigmoid(z) = min(z, 0) - log1p(exp(-|z|))
        log_sig = jnp.minimum(z, 0.0) - jnp.log1p(jnp.exp(-jnp.abs(z)))
        loss_ref[...] = -log_sig
        cr_ref[...] = beta * a
        rr_ref[...] = beta * b


def _dpo_mask_kernel(lac_ref, lar_ref, lrc_ref, lrr_ref, cm_ref, rm_ref,
                     loss_ref, cr_ref, rr_ref, acc_c, acc_r, *, beta, gamma):
    # Generic path: arbitrary (B, S) masks (any numeric dtype) that multiply the
    # log-probs, exactly as the reference does.
    cm = cm_ref[...].astype(jnp.float32)
    rm = rm_ref[...].astype(jnp.float32)
    d_c = (lac_ref[...].astype(jnp.float32) - lrc_ref[...].astype(jnp.float32)) * cm
    d_r = (lar_ref[...].astype(jnp.float32) - lrr_ref[...].astype(jnp.float32)) * rm
    _accumulate_and_finalize(d_c, d_r, loss_ref, cr_ref, rr_ref,
                             acc_c, acc_r, beta, gamma)


def _dpo_len_kernel(clen_ref, rlen_ref, lac_ref, lar_ref, lrc_ref, lrr_ref,
                    loss_ref, cr_ref, rr_ref, acc_c, acc_r, *, beta, gamma):
    # Fast path: 0/1 prefix masks rebuilt in-kernel from per-row lengths.
    # Static local iota compared against (len - tile_offset); jnp.where select
    # instead of materializing and multiplying a float mask.
    tb, ts = lac_ref.shape
    pos = jax.lax.broadcasted_iota(jnp.int32, (tb, ts), 1)
    off = pl.program_id(1) * ts
    cm = pos < (clen_ref[...] - off)
    rm = pos < (rlen_ref[...] - off)
    d_c = jnp.where(cm, lac_ref[...].astype(jnp.float32)
                    - lrc_ref[...].astype(jnp.float32), 0.0)
    d_r = jnp.where(rm, lar_ref[...].astype(jnp.float32)
                    - lrr_ref[...].astype(jnp.float32), 0.0)
    _accumulate_and_finalize(d_c, d_r, loss_ref, cr_ref, rr_ref,
                             acc_c, acc_r, beta, gamma)


def _run(kernel, inputs, in_specs, B, TB, n_seq_steps, vmem_limit, total_bytes):
    out_spec = pl.BlockSpec((TB, 1), lambda bi, sj: (bi, 0))
    losses, chosen_r, rejected_r = pl.pallas_call(
        kernel,
        out_shape=(jax.ShapeDtypeStruct((B, 1), jnp.float32),) * 3,
        grid=(B // TB, n_seq_steps),
        in_specs=in_specs,
        out_specs=(out_spec, out_spec, out_spec),
        scratch_shapes=[pltpu.VMEM((TB, 128), jnp.float32)] * 2,
        compiler_params=pltpu.CompilerParams(
            dimension_semantics=("parallel", "arbitrary"),
            vmem_limit_bytes=vmem_limit),
        cost_estimate=pl.CostEstimate(
            flops=int(6 * total_bytes // 4 + 16 * B),
            transcendentals=int(2 * B),
            bytes_accessed=int(total_bytes)),
    )(*inputs)
    return losses.reshape(B), chosen_r.reshape(B), rejected_r.reshape(B)


def dpo_loss(logprob_actor_chosen, logprob_actor_reject,
             logprob_ref_chosen, logprob_ref_reject,
             chosen_mask, reject_mask, *, beta=0.1, gamma=0.0):
    """Exact module semantics for arbitrary (B, S) masks.  Masks may be f32/bf16/
    int8/bool (cast in-kernel); log-probs may be f32 or bf16 (bf16 halves HBM
    traffic).  If your masks are prefix masks, prefer `dpo_loss_from_lengths`.
    Returns (losses, chosen_rewards, rejected_rewards), each (B,) float32."""
    B, S = logprob_actor_chosen.shape
    TB = _pick_tb(B)
    TS, S_pad = _seq_tiling(S)
    args = [logprob_actor_chosen, logprob_actor_reject,
            logprob_ref_chosen, logprob_ref_reject,
            chosen_mask, reject_mask]
    args = [_pad_seq(a, S_pad) for a in args]      # zero padding == masked out
    big = pl.BlockSpec((TB, TS), lambda bi, sj: (bi, sj))
    kernel = functools.partial(_dpo_mask_kernel, beta=float(beta), gamma=float(gamma))
    step_bytes = TB * TS * sum(a.dtype.itemsize for a in args)
    total_bytes = sum(int(a.size) * a.dtype.itemsize for a in args) + 3 * B * 4
    return _run(kernel, args, [big] * 6, B, TB, S_pad // TS,
                _vmem_limit_bytes(step_bytes), total_bytes)


def dpo_loss_from_lengths(logprob_actor_chosen, logprob_actor_reject,
                          logprob_ref_chosen, logprob_ref_reject,
                          chosen_len, reject_len, *, beta=0.1, gamma=0.0):
    """Preferred path for the common prefix-mask case: per-row valid lengths (B,)
    int32 replace the two (B, S) mask arrays entirely (~33% less HBM traffic at
    f32, the kernel is bandwidth bound on every TPU generation)."""
    B, S = logprob_actor_chosen.shape
    TB = _pick_tb(B)
    TS, S_pad = _seq_tiling(S)
    logps = [_pad_seq(a, S_pad) for a in (logprob_actor_chosen, logprob_actor_reject,
                                          logprob_ref_chosen, logprob_ref_reject)]
    clen2 = chosen_len.astype(jnp.int32).reshape(B, 1)
    rlen2 = reject_len.astype(jnp.int32).reshape(B, 1)
    big = pl.BlockSpec((TB, TS), lambda bi, sj: (bi, sj))
    small = pl.BlockSpec((TB, 1), lambda bi, sj: (bi, 0))
    kernel = functools.partial(_dpo_len_kernel, beta=float(beta), gamma=float(gamma))
    inputs = [clen2, rlen2] + logps
    step_bytes = TB * TS * sum(a.dtype.itemsize for a in logps) + 2 * TB * 4
    total_bytes = sum(int(a.size) * a.dtype.itemsize for a in inputs) + 3 * B * 4
    return _run(kernel, inputs, [small, small] + [big] * 4, B, TB, S_pad // TS,
                _vmem_limit_bytes(step_bytes), total_bytes)


def _reference(lac, lar, lrc, lrr, cm, rm, beta=0.1, gamma=0.0):
    lac = lac * cm
    lar = lar * rm
    lrc = lrc * cm
    lrr = lrr * rm
    ref_logratios = lrc.sum(-1) - lrr.sum(-1)
    pi_logratios = lac.sum(-1) - lar.sum(-1)
    logits = pi_logratios - ref_logratios - gamma / beta
    losses = -jax.nn.log_sigmoid(beta * logits)
    chosen_rewards = beta * (lac.sum(-1) - lrc.sum(-1))
    rejected_rewards = beta * (lar.sum(-1) - lrr.sum(-1))
    return losses, chosen_rewards, rejected_rewards


if __name__ == "__main__":
    key = jax.random.PRNGKey(0)
    # B=16 -> two batch blocks (TB=8); S=1000 is not 128-divisible, so it
    # exercises the zero-pad-to-1024 path (TS=512, two sequence steps).
    B, S = 16, 1000
    k1, k2, k3, k4, k5, k6 = jax.random.split(key, 6)

    # Log-probs are negative; stored in bf16 (kernel upcasts to f32).
    lac = (-jax.random.uniform(k1, (B, S), jnp.float32, 0.1, 2.0)).astype(jnp.bfloat16)
    lar = (-jax.random.uniform(k2, (B, S), jnp.float32, 0.1, 2.0)).astype(jnp.bfloat16)
    lrc = (-jax.random.uniform(k3, (B, S), jnp.float32, 0.1, 2.0)).astype(jnp.bfloat16)
    lrr = (-jax.random.uniform(k4, (B, S), jnp.float32, 0.1, 2.0)).astype(jnp.bfloat16)

    # Prefix-style 0/1 masks and their lengths.
    clen = jax.random.randint(k5, (B,), 1, S + 1, dtype=jnp.int32)
    rlen = jax.random.randint(k6, (B,), 1, S + 1, dtype=jnp.int32)
    pos = jnp.arange(S, dtype=jnp.int32)[None, :]
    cmask_f32 = (pos < clen[:, None]).astype(jnp.float32)
    rmask_f32 = (pos < rlen[:, None]).astype(jnp.float32)

    # Path 1: generic arbitrary-mask kernel (masks streamed as bf16; 0/1 exact).
    out_mask = dpo_loss(lac, lar, lrc, lrr,
                        cmask_f32.astype(jnp.bfloat16), rmask_f32.astype(jnp.bfloat16),
                        beta=0.1, gamma=0.0)
    # Path 2: lengths fast path (no mask arrays at all).
    out_len = dpo_loss_from_lengths(lac, lar, lrc, lrr, clen, rlen,
                                    beta=0.1, gamma=0.0)
    jax.block_until_ready((out_mask, out_len))

    ref = _reference(lac.astype(jnp.float32), lar.astype(jnp.float32),
                     lrc.astype(jnp.float32), lrr.astype(jnp.float32),
                     cmask_f32, rmask_f32, beta=0.1, gamma=0.0)

    for got in (out_mask, out_len):
        for g, r in zip(got, ref):
            assert jnp.allclose(g, r, atol=1e-3, rtol=1e-4), (g, r)

    print("KERNEL_OK")
</pallas_src>

<mosaic_0001>
module attributes {stable_mosaic.version = 11 : i64} {
  func.func @_dpo_mask_kernel(%arg0: i32, %arg1: i32, %arg2: memref<8x1024xbf16, #tpu.memory_space<vmem>>, %arg3: memref<8x1024xbf16, #tpu.memory_space<vmem>>, %arg4: memref<8x1024xbf16, #tpu.memory_space<vmem>>, %arg5: memref<8x1024xbf16, #tpu.memory_space<vmem>>, %arg6: memref<8x1024xbf16, #tpu.memory_space<vmem>>, %arg7: memref<8x1024xbf16, #tpu.memory_space<vmem>>, %arg8: memref<8x1xf32, #tpu.memory_space<vmem>>, %arg9: memref<8x1xf32, #tpu.memory_space<vmem>>, %arg10: memref<8x1xf32, #tpu.memory_space<vmem>>, %arg11: memref<8x128xf32, #tpu.memory_space<vmem>>, %arg12: memref<8x128xf32, #tpu.memory_space<vmem>>) attributes {dimension_semantics = [#tpu.dimension_semantics<parallel>, #tpu.dimension_semantics<arbitrary>], iteration_bounds = array<i64: 2, 1>, scalar_prefetch = 0 : i64, scratch_operands = 2 : i64, tpu.core_type = #tpu.core_type<tc>, window_params = [{transform_indices = @transform_0, window_bounds = array<i64: 8, 1024>}, {transform_indices = @transform_1, window_bounds = array<i64: 8, 1024>}, {transform_indices = @transform_2, window_bounds = array<i64: 8, 1024>}, {transform_indices = @transform_3, window_bounds = array<i64: 8, 1024>}, {transform_indices = @transform_4, window_bounds = array<i64: 8, 1024>}, {transform_indices = @transform_5, window_bounds = array<i64: 8, 1024>}, {transform_indices = @transform_6, window_bounds = array<i64: 8, 1>}, {transform_indices = @transform_7, window_bounds = array<i64: 8, 1>}, {transform_indices = @transform_8, window_bounds = array<i64: 8, 1>}]} {
    %c0 = arith.constant 0 : index
    %c0_0 = arith.constant 0 : index
    %0 = vector.load %arg6[%c0, %c0_0] : memref<8x1024xbf16, #tpu.memory_space<vmem>>, vector<8x1024xbf16>
    %1 = arith.extf %0 : vector<8x1024xbf16> to vector<8x1024xf32>
    %c0_1 = arith.constant 0 : index
    %c0_2 = arith.constant 0 : index
    %2 = vector.load %arg7[%c0_1, %c0_2] : memref<8x1024xbf16, #tpu.memory_space<vmem>>, vector<8x1024xbf16>
    %3 = arith.extf %2 : vector<8x1024xbf16> to vector<8x1024xf32>
    %c0_3 = arith.constant 0 : index
    %c0_4 = arith.constant 0 : index
    %4 = vector.load %arg2[%c0_3, %c0_4] : memref<8x1024xbf16, #tpu.memory_space<vmem>>, vector<8x1024xbf16>
    %5 = arith.extf %4 : vector<8x1024xbf16> to vector<8x1024xf32>
    %c0_5 = arith.constant 0 : index
    %c0_6 = arith.constant 0 : index
    %6 = vector.load %arg4[%c0_5, %c0_6] : memref<8x1024xbf16, #tpu.memory_space<vmem>>, vector<8x1024xbf16>
    %7 = arith.extf %6 : vector<8x1024xbf16> to vector<8x1024xf32>
    %8 = arith.subf %5, %7 : vector<8x1024xf32>
    %9 = arith.mulf %8, %1 : vector<8x1024xf32>
    %c0_7 = arith.constant 0 : index
    %c0_8 = arith.constant 0 : index
    %10 = vector.load %arg3[%c0_7, %c0_8] : memref<8x1024xbf16, #tpu.memory_space<vmem>>, vector<8x1024xbf16>
    %11 = arith.extf %10 : vector<8x1024xbf16> to vector<8x1024xf32>
    %c0_9 = arith.constant 0 : index
    %c0_10 = arith.constant 0 : index
    %12 = vector.load %arg5[%c0_9, %c0_10] : memref<8x1024xbf16, #tpu.memory_space<vmem>>, vector<8x1024xbf16>
    %13 = arith.extf %12 : vector<8x1024xbf16> to vector<8x1024xf32>
    %14 = arith.subf %11, %13 : vector<8x1024xf32>
    %15 = arith.mulf %14, %3 : vector<8x1024xf32>
    %c0_i32 = arith.constant 0 : i32
    %16 = arith.cmpi eq, %arg1, %c0_i32 : i32
    %17 = arith.extui %16 : i1 to i32
    %c0_i32_11 = arith.constant 0 : i32
    %18 = arith.cmpi ne, %17, %c0_i32_11 : i32
    scf.if %18 {
      %cst = arith.constant 0.000000e+00 : f32
      %58 = vector.broadcast %cst : f32 to vector<8x128xf32>
      %c0_22 = arith.constant 0 : index
      %c0_23 = arith.constant 0 : index
      %59 = vector.load %arg11[%c0_22, %c0_23] : memref<8x128xf32, #tpu.memory_space<vmem>>, vector<8x128xf32>
      tpu.vector_store %arg11[%c0_22, %c0_23], %58 {strides = array<i32>} : memref<8x128xf32, #tpu.memory_space<vmem>>, vector<8x128xf32>,
      %cst_24 = arith.constant 0.000000e+00 : f32
      %60 = vector.broadcast %cst_24 : f32 to vector<8x128xf32>
      %c0_25 = arith.constant 0 : index
      %c0_26 = arith.constant 0 : index
      %61 = vector.load %arg12[%c0_25, %c0_26] : memref<8x128xf32, #tpu.memory_space<vmem>>, vector<8x128xf32>
      tpu.vector_store %arg12[%c0_25, %c0_26], %60 {strides = array<i32>} : memref<8x128xf32, #tpu.memory_space<vmem>>, vector<8x128xf32>,
    } else {
    }
    %c0_12 = arith.constant 0 : index
    %c0_13 = arith.constant 0 : index
    %19 = vector.load %arg11[%c0_12, %c0_13] : memref<8x128xf32, #tpu.memory_space<vmem>>, vector<8x128xf32>
    %c0_14 = arith.constant 0 : index
    %c0_15 = arith.constant 0 : index
    %20 = vector.load %arg12[%c0_14, %c0_15] : memref<8x128xf32, #tpu.memory_space<vmem>>, vector<8x128xf32>
    %21 = vector.extract_strided_slice %9 {offsets = [0, 0], sizes = [8, 128], strides = [1, 1]} : vector<8x1024xf32> to vector<8x128xf32>
    %22 = arith.addf %19, %21 : vector<8x128xf32>
    %23 = vector.extract_strided_slice %15 {offsets = [0, 0], sizes = [8, 128], strides = [1, 1]} : vector<8x1024xf32> to vector<8x128xf32>
    %24 = arith.addf %20, %23 : vector<8x128xf32>
    %25 = vector.extract_strided_slice %9 {offsets = [0, 128], sizes = [8, 128], strides = [1, 1]} : vector<8x1024xf32> to vector<8x128xf32>
    %26 = arith.addf %22, %25 : vector<8x128xf32>
    %27 = vector.extract_strided_slice %15 {offsets = [0, 128], sizes = [8, 128], strides = [1, 1]} : vector<8x1024xf32> to vector<8x128xf32>
    %28 = arith.addf %24, %27 : vector<8x128xf32>
    %29 = vector.extract_strided_slice %9 {offsets = [0, 256], sizes = [8, 128], strides = [1, 1]} : vector<8x1024xf32> to vector<8x128xf32>
    %30 = arith.addf %26, %29 : vector<8x128xf32>
    %31 = vector.extract_strided_slice %15 {offsets = [0, 256], sizes = [8, 128], strides = [1, 1]} : vector<8x1024xf32> to vector<8x128xf32>
    %32 = arith.addf %28, %31 : vector<8x128xf32>
    %33 = vector.extract_strided_slice %9 {offsets = [0, 384], sizes = [8, 128], strides = [1, 1]} : vector<8x1024xf32> to vector<8x128xf32>
    %34 = arith.addf %30, %33 : vector<8x128xf32>
    %35 = vector.extract_strided_slice %15 {offsets = [0, 384], sizes = [8, 128], strides = [1, 1]} : vector<8x1024xf32> to vector<8x128xf32>
    %36 = arith.addf %32, %35 : vector<8x128xf32>
    %37 = vector.extract_strided_slice %9 {offsets = [0, 512], sizes = [8, 128], strides = [1, 1]} : vector<8x1024xf32> to vector<8x128xf32>
    %38 = arith.addf %34, %37 : vector<8x128xf32>
    %39 = vector.extract_strided_slice %15 {offsets = [0, 512], sizes = [8, 128], strides = [1, 1]} : vector<8x1024xf32> to vector<8x128xf32>
    %40 = arith.addf %36, %39 : vector<8x128xf32>
    %41 = vector.extract_strided_slice %9 {offsets = [0, 640], sizes = [8, 128], strides = [1, 1]} : vector<8x1024xf32> to vector<8x128xf32>
    %42 = arith.addf %38, %41 : vector<8x128xf32>
    %43 = vector.extract_strided_slice %15 {offsets = [0, 640], sizes = [8, 128], strides = [1, 1]} : vector<8x1024xf32> to vector<8x128xf32>
    %44 = arith.addf %40, %43 : vector<8x128xf32>
    %45 = vector.extract_strided_slice %9 {offsets = [0, 768], sizes = [8, 128], strides = [1, 1]} : vector<8x1024xf32> to vector<8x128xf32>
    %46 = arith.addf %42, %45 : vector<8x128xf32>
    %47 = vector.extract_strided_slice %15 {offsets = [0, 768], sizes = [8, 128], strides = [1, 1]} : vector<8x1024xf32> to vector<8x128xf32>
    %48 = arith.addf %44, %47 : vector<8x128xf32>
    %49 = vector.extract_strided_slice %9 {offsets = [0, 896], sizes = [8, 128], strides = [1, 1]} : vector<8x1024xf32> to vector<8x128xf32>
    %50 = arith.addf %46, %49 : vector<8x128xf32>
    %51 = vector.extract_strided_slice %15 {offsets = [0, 896], sizes = [8, 128], strides = [1, 1]} : vector<8x1024xf32> to vector<8x128xf32>
    %52 = arith.addf %48, %51 : vector<8x128xf32>
    %c0_16 = arith.constant 0 : index
    %c0_17 = arith.constant 0 : index
    %53 = vector.load %arg11[%c0_16, %c0_17] : memref<8x128xf32, #tpu.memory_space<vmem>>, vector<8x128xf32>
    tpu.vector_store %arg11[%c0_16, %c0_17], %50 {strides = array<i32>} : memref<8x128xf32, #tpu.memory_space<vmem>>, vector<8x128xf32>,
    %c0_18 = arith.constant 0 : index
    %c0_19 = arith.constant 0 : index
    %54 = vector.load %arg12[%c0_18, %c0_19] : memref<8x128xf32, #tpu.memory_space<vmem>>, vector<8x128xf32>
    tpu.vector_store %arg12[%c0_18, %c0_19], %52 {strides = array<i32>} : memref<8x128xf32, #tpu.memory_space<vmem>>, vector<8x128xf32>,
    %c0_i32_20 = arith.constant 0 : i32
    %55 = arith.cmpi eq, %arg1, %c0_i32_20 : i32
    %56 = arith.extui %55 : i1 to i32
    %c0_i32_21 = arith.constant 0 : i32
    %57 = arith.cmpi ne, %56, %c0_i32_21 : i32
    scf.if %57 {
      %c0_22 = arith.constant 0 : index
      %c0_23 = arith.constant 0 : index
      %58 = vector.load %arg11[%c0_22, %c0_23] : memref<8x128xf32, #tpu.memory_space<vmem>>, vector<8x128xf32>
      %cst = arith.constant dense<0.000000e+00> : vector<8xf32>
      %59 = vector.multi_reduction <add>, %58, %cst [1] : vector<8x128xf32> to vector<8xf32>
      %60 = vector.shape_cast %59 : vector<8xf32> to vector<8x1xf32>
      %c0_24 = arith.constant 0 : index
      %c0_25 = arith.constant 0 : index
      %61 = vector.load %arg12[%c0_24, %c0_25] : memref<8x128xf32, #tpu.memory_space<vmem>>, vector<8x128xf32>
      %cst_26 = arith.constant dense<0.000000e+00> : vector<8xf32>
      %62 = vector.multi_reduction <add>, %61, %cst_26 [1] : vector<8x128xf32> to vector<8xf32>
      %63 = vector.shape_cast %62 : vector<8xf32> to vector<8x1xf32>
      %64 = arith.subf %60, %63 : vector<8x1xf32>
      %cst_27 = arith.constant 0.000000e+00 : f32
      %65 = vector.broadcast %cst_27 : f32 to vector<8x1xf32>
      %66 = arith.subf %64, %65 : vector<8x1xf32>
      %cst_28 = arith.constant 1.000000e-01 : f32
      %67 = vector.broadcast %cst_28 : f32 to vector<8x1xf32>
      %68 = arith.mulf %67, %66 : vector<8x1xf32>
      %cst_29 = arith.constant 0.000000e+00 : f32
      %69 = vector.broadcast %cst_29 : f32 to vector<8x1xf32>
      %70 = arith.minimumf %68, %69 : vector<8x1xf32>
      %71 = math.absf %68 : vector<8x1xf32>
      %cst_30 = arith.constant 0.000000e+00 : f32
      %72 = vector.broadcast %cst_30 : f32 to vector<8x1xf32>
      %73 = arith.subf %72, %71 : vector<8x1xf32>
      %74 = math.exp %73 : vector<8x1xf32>
      %75 = math.log1p %74 : vector<8x1xf32>
      %76 = arith.subf %70, %75 : vector<8x1xf32>
      %cst_31 = arith.constant 0.000000e+00 : f32
      %77 = vector.broadcast %cst_31 : f32 to vector<8x1xf32>
      %78 = arith.subf %77, %76 : vector<8x1xf32>
      %c0_32 = arith.constant 0 : index
      %c0_33 = arith.constant 0 : index
      %79 = vector.load %arg8[%c0_32, %c0_33] : memref<8x1xf32, #tpu.memory_space<vmem>>, vector<8x1xf32>
      tpu.vector_store %arg8[%c0_32, %c0_33], %78 {strides = array<i32>} : memref<8x1xf32, #tpu.memory_space<vmem>>, vector<8x1xf32>,
      %cst_34 = arith.constant 1.000000e-01 : f32
      %80 = vector.broadcast %cst_34 : f32 to vector<8x1xf32>
      %81 = arith.mulf %80, %60 : vector<8x1xf32>
      %c0_35 = arith.constant 0 : index
      %c0_36 = arith.constant 0 : index
      %82 = vector.load %arg9[%c0_35, %c0_36] : memref<8x1xf32, #tpu.memory_space<vmem>>, vector<8x1xf32>
      tpu.vector_store %arg9[%c0_35, %c0_36], %81 {strides = array<i32>} : memref<8x1xf32, #tpu.memory_space<vmem>>, vector<8x1xf32>,
      %cst_37 = arith.constant 1.000000e-01 : f32
      %83 = vector.broadcast %cst_37 : f32 to vector<8x1xf32>
      %84 = arith.mulf %83, %63 : vector<8x1xf32>
      %c0_38 = arith.constant 0 : index
      %c0_39 = arith.constant 0 : index
      %85 = vector.load %arg10[%c0_38, %c0_39] : memref<8x1xf32, #tpu.memory_space<vmem>>, vector<8x1xf32>
      tpu.vector_store %arg10[%c0_38, %c0_39], %84 {strides = array<i32>} : memref<8x1xf32, #tpu.memory_space<vmem>>, vector<8x1xf32>,
    } else {
    }
    return
  }
  func.func @transform_0(%arg0: i32, %arg1: i32) -> (i32, i32) {
    %c0_i32 = arith.constant 0 : i32
    return %arg0, %arg1 : i32, i32
  }
  func.func @transform_1(%arg0: i32, %arg1: i32) -> (i32, i32) {
    %c0_i32 = arith.constant 0 : i32
    return %arg0, %arg1 : i32, i32
  }
  func.func @transform_2(%arg0: i32, %arg1: i32) -> (i32, i32) {
    %c0_i32 = arith.constant 0 : i32
    return %arg0, %arg1 : i32, i32
  }
  func.func @transform_3(%arg0: i32, %arg1: i32) -> (i32, i32) {
    %c0_i32 = arith.constant 0 : i32
    return %arg0, %arg1 : i32, i32
  }
  func.func @transform_4(%arg0: i32, %arg1: i32) -> (i32, i32) {
    %c0_i32 = arith.constant 0 : i32
    return %arg0, %arg1 : i32, i32
  }
  func.func @transform_5(%arg0: i32, %arg1: i32) -> (i32, i32) {
    %c0_i32 = arith.constant 0 : i32
    return %arg0, %arg1 : i32, i32
  }
  func.func @transform_6(%arg0: i32, %arg1: i32) -> (i32, i32) {
    %c0_i32 = arith.constant 0 : i32
    %c0_i32_0 = arith.constant 0 : i32
    return %arg0, %c0_i32 : i32, i32
  }
  func.func @transform_7(%arg0: i32, %arg1: i32) -> (i32, i32) {
    %c0_i32 = arith.constant 0 : i32
    %c0_i32_0 = arith.constant 0 : i32
    return %arg0, %c0_i32 : i32, i32
  }
  func.func @transform_8(%arg0: i32, %arg1: i32) -> (i32, i32) {
    %c0_i32 = arith.constant 0 : i32
    %c0_i32_0 = arith.constant 0 : i32
    return %arg0, %c0_i32 : i32, i32
  }
}

</mosaic_0001>

<bundles_post_ra>
// kernel: tpu_custom_call.1
= control target key start
LH: loop header
LB: loop body
LE: loop exit
PB: predicated region body
PF: predicated region fallthrough
CT: control target
= control target key end

     0   :  { %s1640_s0 = inlined_call_operand.hbm [shape: bf16[16,1024], index: 0, kind: input, shape index: {}]   ;;  %s1641_s1 = inlined_call_operand.hbm [shape: bf16[16,1024], index: 1, kind: input, shape index: {}]   ;;  %s1642_s2 = inlined_call_operand.hbm [shape: bf16[16,1024], index: 2, kind: input, shape index: {}]   ;;  %s1643_s3 = inlined_call_operand.hbm [shape: bf16[16,1024], index: 3, kind: input, shape index: {}]   ;;  %s1644_s4 = inlined_call_operand.hbm [shape: bf16[16,1024], index: 4, kind: input, shape index: {}]   ;;  %s1645_s5 = inlined_call_operand.hbm [shape: bf16[16,1024], index: 5, kind: input, shape index: {}]   ;;  %s1646_s6 = inlined_call_operand.vmem [shape: f32[16,1], index: 6, kind: output, shape index: {0}]   ;;  %s1647_s7 = inlined_call_operand.vmem [shape: f32[16,1], index: 7, kind: output, shape index: {1}]   ;;  %s1648_s8 = inlined_call_operand.vmem [shape: f32[16,1], index: 8, kind: output, shape index: {2}]  }
   0x1   :  { %1653 = sst [smem:[#allocation22_spill]] %s1641_s1 }
   0x2   :  { %1654 = sst [smem:[#allocation23_spill]] %s1643_s3 }
   0x3   :  { %1655 = sst [smem:[#allocation24_spill]] %s1646_s6 }
   0x4   :  { %1656 = sst [smem:[#allocation25_spill]] %s1648_s8 }
   0x5   :  { %14 = vsyncpa [#allocation5], 0 }
   0x6   :  { %16 = vsyncpa [#allocation5 + $0x1], 0 }
   0x7   :  { %17 = vsyncpa [#allocation7], 0 }
   0x8   :  { %19 = vsyncpa [#allocation7 + $0x1], 0 }
   0x9   :  { %20 = vsyncpa [#allocation10], 0 }
   0xa   :  { %22 = vsyncpa [#allocation10 + $0x1], 0 }
   0xb   :  { %23 = vsyncpa [#allocation13], 0 }
   0xc   :  { %25 = vsyncpa [#allocation13 + $0x1], 0  ;;  %s1401_s27 = smov 0   ;;  %s1403_s28 = smov 0  }
   0xd   :  { %s1405_s29 = smov 0   ;;  %s1407_s30 = smov 0  }
   0xe   :  { %s1409_s9 = smov 0   ;;  %s1411_s10 = smov 0  }
   0xf LB: > { %1657 = sst [smem:[#allocation18_spill]] %s1336_s29  ;;  %s1649_s11 = sadd.s32 4294967295, %s1348_s10   ;;  %s1348_s10 = sphi %s1411_s10, %s31_s10   ;;  %s1344_s9 = sphi %s1409_s9, %s1673_s9   ;;  %s1340_s30 = sphi %s1407_s30, %s1672_s30   ;;  %s1336_s29 = sphi %s1405_s29, %s1671_s29   ;;  %s1332_s28 = sphi %s1403_s28, %s1675_s28   ;;  %s1328_s27 = sphi %s1401_s27, %s1674_s27  }
  0x10   : > { %1658 = sst [smem:[#allocation19_spill]] %s1344_s9  ;;  %s43_s12 = sadd.s32 1, %s1344_s9 }
  0x11   : > { %p45_p0 = scmp.ge.s32.totalorder %s43_s12, 2  ;;  %s52_s13 = sadd.s32 1, %s1336_s29 }
  0x12   : > { %p59_p1 = scmp.ne.s32.totalorder %s1336_s29, %s1332_s28  ;;  %p60_p2 = scmp.eq.s32.totalorder %s1348_s10, 0 }
  0x13   : > { %s1677_s12 = smov (%p45_p0, %s43_s12), 0  ;;  %p65_p4 = scmp.ne.s32.totalorder %s1332_s28, %s1328_s27 }
  0x14   : > { %1659 = sst [smem:[#allocation20_spill]] %s1677_s12  ;;  %p61_p3 = por %p60_p2, %p59_p1 }
  0x15   : > { %s47_s14 = ssub.s32 %s1344_s9, %s1677_s12  ;;  %p66_p5 = scmp.eq.s32.totalorder %s1649_s11, 0 }
  0x16   : > { %p50_p6 = scmp.eq.s32.totalorder %s47_s14, 0  ;;  %p1065_p8 = scmp.lt.s32.totalorder %s1348_s10, 2 }
  0x17   : > { %p1442_p7 = por %p66_p5, %p65_p4  ;;  %s1451_s17 = sand.u32 1, %s1336_s29  }
  0x18   : > { %s1448_s16 = scalar_select %p50_p6, %s1336_s29, %s52_s13  }
  0x19   : > { %s1454_s18 = sshll.u32 %s1344_s9, 9  ;;  %s1457_s19 = sshll.u32 %s1451_s17, 5 }
  0x1a   : > { %1661 = sst [smem:[#allocation21_spill]] %s1448_s16  ;;  %p1459_p9 = pnand %p1065_p8, %p61_p3 }
  0x1b   : > { %s328_s21 = sand.u32 1, %s1348_s10   ;;  %s1663_s1 = sld [smem:[#allocation22_spill]] }
  0x1c   : > { %s332_s25 = scalar_lea.vmem [#allocation6], %s1457_s19  ;;  %p1016_p10 = scmp.ge.s32.totalorder %s1348_s10, 1 }
  0x1d   : > { %s342_s26 = sshll.u32 %s332_s25, 4  ;;  %s1470_s27 = scalar_lea.sflag [#allocation7], %s328_s21  ;;  %s343_s26 = int_to_ptr.vmem [resolvable:$true] %s342_s26 }
  0x1e   : > { %p1474_p11 = pneg %p1459_p9  ;;  %s1131_s14 = scalar_lea.vmem %s343_s26, 512 }
  0x1f   : > { %p1132_p12 = scmp.ne.s32.totalorder %s343_s26, %s1131_s14  ;;  %s1350_s11 = smov [#allocation6]  }
  0x20   : > { %s1136_s22 = sshll.u32 %s1350_s11, 4  ;;  %s1137_s22 = int_to_ptr.vmem [resolvable:$false] %s1136_s22 }
  0x21   : > { %s340_s24 = scalar_lea.hbm %s1663_s1, %s1454_s18  ;;  %p1134_p13 = pnand %p1132_p12, %p1474_p11 }
  0x22   : > { %s1138_s23 = scalar_lea.vmem %s1137_s22, 1024  ;;  %p1139_p1 = scmp.lt.s32.totalorder %s343_s26, %s1137_s22 }
  0x23   : > { %p1135_p0 = pneg %p1134_p13  ;;  %p1140_p2 = scmp.lt.s32.totalorder %s1138_s23, %s1131_s14 }
  0x25   : > { %p1141_p3 = por %p1140_p2, %p1139_p1 }
  0x27   : > { %p1142_p4 = pnand %p1141_p3, %p1135_p0 }
  0x29   : > { %1145 = shalt.err (!%p1142_p4)
}
  0x2a   : > { %1052 = dma.hbm_to_vmem [thread:$0]  (!%p1459_p9), %s340_s24, 512, %s343_s26, %s1470_s27  }
  0x2b   : > { %p431_p5 = scmp.lt.s32.totalorder %s1348_s10, 3  ;;  %s1665_s3 = sld [smem:[#allocation23_spill]] }
  0x2c   : > { %s374_s22 = scalar_lea.vmem [#allocation9], %s1457_s19  ;;  %s1495_s12 = scalar_lea.sflag [#allocation10], %s328_s21 }
  0x2d   : > { %p1490_p6 = pnand %p1016_p10, %p431_p5  ;;  %s384_s23 = sshll.u32 %s374_s22, 4  ;;  %s385_s23 = int_to_ptr.vmem [resolvable:$true] %s384_s23 }
  0x2e   : > { %s1159_s9 = scalar_lea.vmem %s385_s23, 512  ;;  %s1351_s24 = smov [#allocation9]  }
  0x2f   : > { %p1160_p8 = scmp.ne.s32.totalorder %s385_s23, %s1159_s9  ;;  %s1164_s26 = sshll.u32 %s1351_s24, 4  ;;  %s1165_s26 = int_to_ptr.vmem [resolvable:$false] %s1164_s26 }
  0x30   : > { %s1166_s1 = scalar_lea.vmem %s1165_s26, 1024  ;;  %p1167_p0 = scmp.lt.s32.totalorder %s385_s23, %s1165_s26 }
  0x31   : > { %s382_s11 = scalar_lea.hbm %s1665_s3, %s1454_s18  ;;  %p1162_p12 = pnand %p1160_p8, %p1474_p11 }
  0x32   : > { %p1168_p1 = scmp.lt.s32.totalorder %s1166_s1, %s1159_s9 }
  0x33   : > { %p1163_p13 = pneg %p1162_p12 }
  0x34   : > { %p1169_p10 = por %p1168_p1, %p1167_p0 }
  0x36   : > { %p1170_p2 = pnand %p1169_p10, %p1163_p13 }
  0x38   : > { %1173 = shalt.err (!%p1170_p2)
}
  0x39   : > { %1058 = dma.hbm_to_vmem [thread:$0]  (!%p1459_p9), %s382_s11, 512, %s385_s23, %s1495_s12  }
  0x3a   : > { %s319_s22 = scalar_lea.hbm %s1640_s0, %s1454_s18  ;;  %s311_s24 = scalar_lea.vmem [#allocation4], %s1457_s19 }
  0x3b   : > { %s321_s3 = sshll.u32 %s311_s24, 4  ;;  %s361_s1 = scalar_lea.hbm %s1642_s2, %s1454_s18  ;;  %s322_s3 = int_to_ptr.vmem [resolvable:$true] %s321_s3 }
  0x3c   : > { %s308_s16 = scalar_lea.sflag [#allocation5], %s1451_s17  ;;  %s1187_s29 = scalar_lea.vmem %s322_s3, 512 }
  0x3d   : > { %p1188_p3 = scmp.ne.s32.totalorder %s322_s3, %s1187_s29  ;;  %s1352_s6 = smov [#allocation4]  }
  0x3e   : > { %s1192_s8 = sshll.u32 %s1352_s6, 4  ;;  %s1193_s8 = int_to_ptr.vmem [resolvable:$false] %s1192_s8 }
  0x3f   : > { %p1190_p4 = pnand %p1188_p3, %p1474_p11  ;;  %s1194_s11 = scalar_lea.vmem %s1193_s8, 1024 }
  0x40   : > { %p1195_p8 = scmp.lt.s32.totalorder %s322_s3, %s1193_s8  ;;  %p1196_p12 = scmp.lt.s32.totalorder %s1194_s11, %s1187_s29 }
  0x41   : > { %p1191_p5 = pneg %p1190_p4 }
  0x42   : > { %p1197_p13 = por %p1196_p12, %p1195_p8 }
  0x44   : > { %p1198_p0 = pnand %p1197_p13, %p1191_p5 }
  0x46   : > { %1201 = shalt.err (!%p1198_p0)
}
  0x47   : > { %1049 = dma.hbm_to_vmem [thread:$0]  (!%p1459_p9), %s319_s22, 512, %s322_s3, %s308_s16  }
  0x48   : > { %s353_s23 = scalar_lea.vmem [#allocation8], %s1457_s19  ;;  %s403_s6 = scalar_lea.hbm %s1644_s4, %s1454_s18 }
  0x49   : > { %s363_s21 = sshll.u32 %s353_s23, 4  ;;  %s1353_s8 = smov [#allocation8]   ;;  %s364_s21 = int_to_ptr.vmem [resolvable:$true] %s363_s21 }
  0x4a   : > { %s1215_s9 = scalar_lea.vmem %s364_s21, 512  ;;  %s1220_s29 = sshll.u32 %s1353_s8, 4  ;;  %s1221_s29 = int_to_ptr.vmem [resolvable:$false] %s1220_s29 }
  0x4b   : > { %p1216_p1 = scmp.ne.s32.totalorder %s364_s21, %s1215_s9  ;;  %s1222_s26 = scalar_lea.vmem %s1221_s29, 1024 }
  0x4c   : > { %p1223_p3 = scmp.lt.s32.totalorder %s364_s21, %s1221_s29  ;;  %p1224_p4 = scmp.lt.s32.totalorder %s1222_s26, %s1215_s9 }
  0x4d   : > { %p1218_p10 = pnand %p1216_p1, %p1474_p11 }
  0x4e   : > { %p1225_p5 = por %p1224_p4, %p1223_p3 }
  0x4f   : > { %p1219_p2 = pneg %p1218_p10 }
  0x51   : > { %p1226_p8 = pnand %p1225_p5, %p1219_p2 }
  0x53   : > { %1229 = shalt.err (!%p1226_p8)
}
  0x54   : > { %1055 = dma.hbm_to_vmem [thread:$0]  (!%p1459_p9), %s361_s1, 512, %s364_s21, %s1470_s27  }
  0x55   : > { %s395_s22 = scalar_lea.vmem [#allocation11], %s1457_s19  ;;  %s1354_s25 = smov [#allocation11]  }
  0x56   : > { %s405_s11 = sshll.u32 %s395_s22, 4  ;;  %s1248_s24 = sshll.u32 %s1354_s25, 4  ;;  %s406_s11 = int_to_ptr.vmem [resolvable:$true] %s405_s11  ;;  %s1249_s24 = int_to_ptr.vmem [resolvable:$false] %s1248_s24 }
  0x57   : > { %s1243_s23 = scalar_lea.vmem %s406_s11, 512  ;;  %s1250_s9 = scalar_lea.vmem %s1249_s24, 1024 }
  0x58   : > { %p1244_p12 = scmp.ne.s32.totalorder %s406_s11, %s1243_s23  ;;  %p1251_p1 = scmp.lt.s32.totalorder %s406_s11, %s1249_s24 }
  0x59   : > { %p1252_p10 = scmp.lt.s32.totalorder %s1250_s9, %s1243_s23 }
  0x5a   : > { %p1246_p13 = pnand %p1244_p12, %p1474_p11 }
  0x5b   : > { %p1253_p2 = por %p1252_p10, %p1251_p1 }
  0x5c   : > { %p1247_p0 = pneg %p1246_p13 }
  0x5e   : > { %p1254_p3 = pnand %p1253_p2, %p1247_p0 }
  0x60   : > { %1257 = shalt.err (!%p1254_p3)
}
  0x61   : > { %1061 = dma.hbm_to_vmem [thread:$0]  (!%p1459_p9), %s403_s6, 512, %s406_s11, %s1495_s12  }
  0x62   : > { %s424_s29 = scalar_lea.hbm %s1645_s5, %s1454_s18  ;;  %s416_s26 = scalar_lea.vmem [#allocation12], %s1457_s19 }
  0x63   : > { %s426_s3 = sshll.u32 %s416_s26, 4  ;;  %s413_s16 = scalar_lea.sflag [#allocation13], %s1451_s17  ;;  %s427_s3 = int_to_ptr.vmem [resolvable:$true] %s426_s3 }
  0x64   : > { %s1271_s22 = scalar_lea.vmem %s427_s3, 512  ;;  %s1355_s23 = smov [#allocation12]  }
  0x65   : > { %p1272_p4 = scmp.ne.s32.totalorder %s427_s3, %s1271_s22  ;;  %s1276_s25 = sshll.u32 %s1355_s23, 4  ;;  %s1277_s25 = int_to_ptr.vmem [resolvable:$false] %s1276_s25 }
  0x66   : > { %s1278_s24 = scalar_lea.vmem %s1277_s25, 1024  ;;  %p1279_p12 = scmp.lt.s32.totalorder %s427_s3, %s1277_s25 }
  0x67   : > { %p1274_p5 = pnand %p1272_p4, %p1474_p11  ;;  %p1280_p13 = scmp.lt.s32.totalorder %s1278_s24, %s1271_s22 }
  0x69   : > { %p1275_p8 = pneg %p1274_p5  ;;  %p1281_p0 = por %p1280_p13, %p1279_p12 }
  0x6b   : > { %p1282_p1 = pnand %p1281_p0, %p1275_p8 }
  0x6d   : > { %1285 = shalt.err (!%p1282_p1)
}
  0x6e   : > { %1064 = dma.hbm_to_vmem [thread:$0]  (!%p1459_p9), %s424_s29, 512, %s427_s3, %s413_s16  }
  0x6f   : > { %435 = sbr.rel (%p1490_p6) target bundleno = 347 (0x15b), region = 44  ;;  %s437_s12 = sand.u32 (!%p1490_p6), 1, %s1332_s28  }
  0x70   : > { %s1017_s17 = sshll.u32 (!%p1490_p6), %s437_s12, 5  ;;  %s438_s18 = scalar_lea.sflag (!%p1490_p6), [#allocation5], %s437_s12 }
  0x71   : > { %s1555_s19 = scalar_lea.vmem (!%p1490_p6), [#allocation4], %s1017_s17 }
  0x74   : > { %1311 = dma.done.wait (%p1442_p7), %s438_s18, 512  }
  0x75   : > { %1313 = vsyncadd (%p1442_p7), %s438_s18, 4294966784  ;;  %s1667_s13 = sadd.s32 4294967295, %s1348_s10   ;;  %s1563_s11 = scalar_lea.vmem [#allocation6], %s1017_s17 }
  0x76   : > { %s446_s20 = sand.u32 1, %s1667_s13  }
  0x77   : > { %s447_s6 = scalar_lea.sflag [#allocation7], %s446_s20 }
  0x78   : > { %1315 = dma.done.wait (%p1442_p7), %s447_s6, 1024  }
  0x79   : > { %1317 = vsyncadd (%p1442_p7), %s447_s6, 4294966272  ;;  %s1569_s14 = scalar_lea.vmem [#allocation8], %s1017_s17  ;;  %s465_s9 = scalar_lea.sflag [#allocation10], %s446_s20 }
  0x7a   : > { %s1571_s27 = scalar_lea.vmem [#allocation9], %s1017_s17 }
  0x7b   : > { %1319 = dma.done.wait (%p1442_p7), %s465_s9, 1024  }
  0x7c   : > { %1321 = vsyncadd (%p1442_p7), %s465_s9, 4294966272  ;;  %s477_s1 = scalar_lea.vmem [#allocation11], %s1017_s17  ;;  %s483_s21 = scalar_lea.sflag [#allocation13], %s437_s12 }
  0x7d   : > { %s1577_s8 = scalar_lea.vmem [#allocation12], %s1017_s17 }
  0x7e   : > { %1323 = dma.done.wait (%p1442_p7), %s483_s21, 512  }
  0x7f   : > { %1325 = vsyncadd (%p1442_p7), %s483_s21, 4294966784  ;;  %v569_v0 = vld [vmem:[%s477_s1] sm:$0xff]  ;;  %v570_v1 = vld [vmem:[%s477_s1 + $0x8] sm:$0xff]  ;;  %p557_p7 = scmp.lt.s32.totalorder %s1340_s30, 1  ;;  %vm726_vm0 = vcmask 7168   ;;  %s1668_s23 = sld [smem:[#allocation25_spill]] }
  0x80   : > { %v571_v2 = vld [vmem:[%s477_s1 + $0x10] sm:$0xff]  ;;  %v572_v3 = vld [vmem:[%s477_s1 + $0x18] sm:$0xff]  ;;  %v573_v4 = vunpack.c.l.bf16 %v569_v0  ;;  %v574_v5 = vunpack.c.h.bf16 %v569_v0  ;;  %v575_v6 = vunpack.c.l.bf16 %v570_v1  ;;  %v593_v7 = vld [vmem:[%s1555_s19] sm:$0xff]  ;;  %v576_v9 = vunpack.c.h.bf16 %v570_v1  ;;  %s1669_s12 = sld [smem:[#allocation24_spill]] }
  0x81   : > { %v594_v8 = vld [vmem:[%s1555_s19 + $0x8] sm:$0xff]  ;;  %v577_v10 = vunpack.c.l.bf16 %v571_v2  ;;  %v578_v11 = vunpack.c.h.bf16 %v571_v2  ;;  %v579_v12 = vunpack.c.l.bf16 %v572_v3  ;;  %v595_v13 = vld [vmem:[%s1555_s19 + $0x10] sm:$0xff]  ;;  %v596_v14 = vld [vmem:[%s1555_s19 + $0x18] sm:$0xff]  ;;  %v597_v16 = vunpack.c.l.bf16 %v593_v7  ;;  %s1679_s30 = smov (!%p557_p7, %s1340_s30), 1 }
  0x82   : > { %v605_v15 = vld [vmem:[%s1569_s14] sm:$0xff]  ;;  %v598_v17 = vunpack.c.h.bf16 %v593_v7  ;;  %v599_v18 = vunpack.c.l.bf16 %v594_v8  ;;  %v600_v19 = vunpack.c.h.bf16 %v594_v8  ;;  %v606_v20 = vld [vmem:[%s1569_s14 + $0x8] sm:$0xff]  ;;  %v607_v21 = vld [vmem:[%s1569_s14 + $0x10] sm:$0xff]  ;;  %v601_v23 = vunpack.c.l.bf16 %v595_v13  ;;  %s1605_s15 = sshll.u32 %s1679_s30, 3 }
  0x83   : > { %v608_v22 = vld [vmem:[%s1569_s14 + $0x18] sm:$0xff]  ;;  %v602_v24 = vunpack.c.h.bf16 %v595_v13  ;;  %v603_v25 = vunpack.c.l.bf16 %v596_v14  ;;  %v604_v26 = vunpack.c.h.bf16 %v596_v14  ;;  %v609_v27 = vunpack.c.l.bf16 %v605_v15  ;;  %v581_v47 = vld [vmem:[%s1577_s8] sm:$0xff]  ;;  %v634_v51 = vld [vmem:[%s1563_s11 + $0x8] sm:$0xff]  ;;  %s564_s3 = scalar_lea.vmem %s1647_s7, %s1605_s15 }
  0x84   : > { %v610_v28 = vunpack.c.h.bf16 %v605_v15  ;;  %v611_v29 = vunpack.c.l.bf16 %v606_v20  ;;  %v612_v30 = vunpack.c.h.bf16 %v606_v20  ;;  %v613_v31 = vunpack.c.l.bf16 %v607_v21  ;;  %v633_v50 = vld [vmem:[%s1563_s11] sm:$0xff]  ;;  %v582_v55 = vld [vmem:[%s1577_s8 + $0x8] sm:$0xff]  ;;  %v635_v56 = vld [vmem:[%s1563_s11 + $0x10] sm:$0xff] }
  0x85   : > { %v614_v32 = vunpack.c.h.bf16 %v607_v21  ;;  %v615_v33 = vunpack.c.l.bf16 %v608_v22  ;;  %v616_v34 = vunpack.c.h.bf16 %v608_v22  ;;  %v617_v35 = vsub.f32 %v597_v16, %v609_v27  ;;  %v645_v57 = vld [vmem:[%s1571_s27] sm:$0xff]  ;;  %v646_v62 = vld [vmem:[%s1571_s27 + $0x8] sm:$0xff]  ;;  %v647_v63 = vld [vmem:[%s1571_s27 + $0x10] sm:$0xff]  ;;  %s568_s25 = scalar_lea.vmem %s1668_s23, %s1605_s15 }
  0x86   : > { %v618_v36 = vsub.f32 %v598_v17, %v610_v28  ;;  %v619_v37 = vsub.f32 %v599_v18, %v611_v29  ;;  %v620_v38 = vsub.f32 %v600_v19, %v612_v30  ;;  %v580_v39 = vunpack.c.h.bf16 %v572_v3  ;;  %v583_v8 = vld [vmem:[%s1577_s8 + $0x10] sm:$0xff]  ;;  %s560_s17 = scalar_lea.vmem %s1669_s12, %s1605_s15 }
  0x87   : > { %v621_v40 = vsub.f32 %v601_v23, %v613_v31  ;;  %v622_v41 = vsub.f32 %v602_v24, %v614_v32  ;;  %v623_v42 = vsub.f32 %v603_v25, %v615_v33  ;;  %v624_v43 = vsub.f32 %v604_v26, %v616_v34  ;;  %v584_v32 = vld [vmem:[%s1577_s8 + $0x18] sm:$0xff] }
  0x88   : > { %v625_v44 = vmul.f32 %v617_v35, %v573_v4  ;;  %v626_v45 = vmul.f32 %v618_v36, %v574_v5  ;;  %v627_v46 = vmul.f32 %v619_v37, %v575_v6  ;;  %v628_v48 = vmul.f32 %v620_v38, %v576_v9  ;;  %v636_v9 = vld [vmem:[%s1563_s11 + $0x18] sm:$0xff] }
  0x89   : > { %v629_v52 = vmul.f32 %v621_v40, %v577_v10  ;;  %v630_v53 = vmul.f32 %v622_v41, %v578_v11  ;;  %v631_v54 = vmul.f32 %v623_v42, %v579_v12  ;;  %v632_v58 = vmul.f32 %v624_v43, %v580_v39  ;;  %v648_v10 = vld [vmem:[%s1571_s27 + $0x18] sm:$0xff] }
  0x8a   : > { %v683_v49 = vadd.f32 %v626_v45, %v625_v44  ;;  %v585_v60 = vunpack.c.l.bf16 %v581_v47  ;;  %v586_v61 = vunpack.c.h.bf16 %v581_v47  ;;  %v637_v0 = vunpack.c.l.bf16 %v633_v50 }
  0x8b   : > { %v638_v1 = vunpack.c.h.bf16 %v633_v50  ;;  %v639_v2 = vunpack.c.l.bf16 %v634_v51  ;;  %v640_v3 = vunpack.c.h.bf16 %v634_v51  ;;  %v587_v5 = vunpack.c.l.bf16 %v582_v55 }
  0x8c   : > { %v685_v59 = vadd.f32 %v683_v49, %v627_v46  ;;  %v641_v6 = vunpack.c.l.bf16 %v635_v56  ;;  %v649_v7 = vunpack.c.l.bf16 %v645_v57  ;;  %v650_v11 = vunpack.c.h.bf16 %v645_v57 }
  0x8d   : > { %v651_v12 = vunpack.c.l.bf16 %v646_v62  ;;  %v652_v13 = vunpack.c.h.bf16 %v646_v62  ;;  %v653_v14 = vunpack.c.l.bf16 %v647_v63  ;;  %v588_v16 = vunpack.c.h.bf16 %v582_v55 }
  0x8e   : > { %v687_v4 = vadd.f32 %v685_v59, %v628_v48  ;;  %v642_v17 = vunpack.c.h.bf16 %v635_v56  ;;  %v654_v18 = vunpack.c.h.bf16 %v647_v63  ;;  %v657_v19 = vsub.f32 %v637_v0, %v649_v7 }
  0x8f   : > { %v658_v20 = vsub.f32 %v638_v1, %v650_v11  ;;  %v659_v21 = vsub.f32 %v639_v2, %v651_v12  ;;  %v660_v22 = vsub.f32 %v640_v3, %v652_v13  ;;  %v589_v24 = vunpack.c.l.bf16 %v583_v8 }
  0x90   : > { %v689_v15 = vadd.f32 %v687_v4, %v629_v52  ;;  %v643_v25 = vunpack.c.l.bf16 %v636_v9  ;;  %v655_v26 = vunpack.c.l.bf16 %v648_v10  ;;  %v661_v27 = vsub.f32 %v641_v6, %v653_v14 }
  0x91   : > { %v665_v28 = vmul.f32 %v657_v19, %v585_v60  ;;  %v666_v29 = vmul.f32 %v658_v20, %v586_v61  ;;  %v667_v30 = vmul.f32 %v659_v21, %v587_v5  ;;  %v590_v33 = vunpack.c.h.bf16 %v583_v8 }
  0x92   : > { %v691_v23 = vadd.f32 %v689_v15, %v630_v53  ;;  %v644_v34 = vunpack.c.h.bf16 %v636_v9  ;;  %v656_v35 = vunpack.c.h.bf16 %v648_v10  ;;  %v662_v36 = vsub.f32 %v642_v17, %v654_v18 }
  0x93   : > { %v668_v37 = vmul.f32 %v660_v22, %v588_v16  ;;  %v684_v38 = vadd.f32 %v666_v29, %v665_v28  ;;  %v591_v40 = vunpack.c.l.bf16 %v584_v32  ;;  %v663_v41 = vsub.f32 %v643_v25, %v655_v26 }
  0x94   : > { %v693_v31 = vadd.f32 %v691_v23, %v631_v54  ;;  %v669_v42 = vmul.f32 %v661_v27, %v589_v24  ;;  %v592_v44 = vunpack.c.h.bf16 %v584_v32  ;;  %v664_v45 = vsub.f32 %v644_v34, %v656_v35 }
  0x95   : > { %v686_v43 = vadd.f32 %v684_v38, %v667_v30  ;;  %v670_v46 = vmul.f32 %v662_v36, %v590_v33  ;;  %v671_v48 = vmul.f32 %v663_v41, %v591_v40 }
  0x96   : > { %v695_v39 = vadd.f32 %v693_v31, %v632_v58  ;;  %v672_v50 = vmul.f32 %v664_v45, %v592_v44 }
  0x97   : > { %v688_v47 = vadd.f32 %v686_v43, %v668_v37 }
  0x98   : > { %703 = vadd.xlane.f32.xlu0 %v695_v39 }
  0x99   : > { %v690_v49 = vadd.f32 %v688_v47, %v669_v42 }
  0x9b   : > { %v692_v51 = vadd.f32 %v690_v49, %v670_v46 }
  0x9d   : > { %v694_v52 = vadd.f32 %v692_v51, %v671_v48 }
  0x9f   : > { %v696_v53 = vadd.f32 %v694_v52, %v672_v50 }
  0xa1   : > { %706 = vadd.xlane.f32.xlu0 %v696_v53 }
 0x121   : > { %v704_v54 = vpop.xlane.xlu0 %703 }
 0x122   : > { %v728_v55 = vmul.f32 0.1, %v704_v54 }
 0x124   : > { %729 = vst.msk [vmem:[%s564_s3] sm:$0xff] %vm726_vm0, %v728_v55 }
 0x12a   : > { %v707_v56 = vpop.xlane.xlu0 %706 }
 0x12b   : > { %v708_v57 = vsub.f32 %v704_v54, %v707_v56  ;;  %v730_v58 = vmul.f32 0.1, %v707_v56 }
 0x12d   : > { %v709_v59 = vmul.f32 0.1, %v708_v57  ;;  %731 = vst.msk [vmem:[%s568_s25] sm:$0xff] %vm726_vm0, %v730_v58 }
 0x12f   : > { %v711_v60 = vand.u32 2147483647, %v709_v59  ;;  %v710_v7 = vmin.f32 %v709_v59, 0.0 }
 0x131   : > { %v712_v61 = vsub.f32 0.0, %v711_v60 }
 0x133   : > { %v713_v62 = vmul.f32 1.442695, %v712_v61 }
 0x135   : > { %1114 = vpow2.f32 %v713_v62 }
 0x142   : > { %v1115_v63 = vpop.eup %1114 }
 0x143   : > { %v715_v0 = vadd.f32 1.0, %v1115_v63  ;;  %v718_v1 = vmul.f32 -0.5, %v1115_v63  ;;  %v721_v3 = vand.u32 2147483647, %v1115_v63 }
 0x145   : > { %1116 = vlog2.f32 %v715_v0  ;;  %v719_v2 = vadd.f32 1.0, %v718_v1  ;;  %vm722_vm1 = vcmp.lt.f32.partialorder %v721_v3, 0.0004427343 }
 0x147   : > { %v720_v6 = vmul.f32 %v1115_v63, %v719_v2 }
 0x152   : > { %v1117_v4 = vpop.eup %1116 }
 0x153   : > { %v717_v5 = vmul.f32 0.6931472, %v1117_v4 }
 0x155   : > { %v723_v8 = vsel %vm722_vm1, %v720_v6, %v717_v5 }
 0x156   : > { %v724_v9 = vsub.f32 %v710_v7, %v723_v8 }
 0x158   : > { %v725_v10 = vsub.f32 0.0, %v724_v9 }
 0x15a   : > { %727 = vst.msk [vmem:[%s560_s17] sm:$0xff] %vm726_vm0, %v725_v10 }
 0x15b PF: > { %s31_s10 = sadd.s32 1, %s1348_s10   ;;  %s1670_s18 = sld [smem:[#allocation18_spill]] }
 0x15c   : > { %p28_p9 = scmp.ge.s32.totalorder %s31_s10, 4   ;;  %s1671_s29 = sld [smem:[#allocation21_spill]] }
 0x15d   : > { %s1672_s30 = sld [smem:[#allocation19_spill]]  ;;  %s1674_s27 = smov %s1332_s28 }
 0x15e   : > { %s1673_s9 = sld [smem:[#allocation20_spill]]  ;;  %30 = sbr.rel (!%p28_p9) target bundleno = 15 (0xf), region = 177 }
 0x161   : > { %s1675_s28 = smov %s1670_s18 }
 0x163   :  { %779 = vsyncpa [#allocation5], 1 }
 0x164   :  { %781 = vsyncpa [#allocation5 + $0x1], 1 }
 0x165   :  { %782 = vsyncpa [#allocation7], 1 }
 0x166   :  { %784 = vsyncpa [#allocation7 + $0x1], 1 }
 0x167   :  { %785 = vsyncpa [#allocation10], 1 }
 0x168   :  { %787 = vsyncpa [#allocation10 + $0x1], 1 }
 0x169   :  { %788 = vsyncpa [#allocation13], 1 }
 0x16a   :  { %790 = vsyncpa [#allocation13 + $0x1], 1 }

</bundles_post_ra>
